<compile_context>
chip_gen: v5e
topology: v5e:2x2
jax: 0.10.0
libtpu: 0.0.40
codegen_flags: <defaults>
</compile_context>

<pallas_src>
import functools
import math

import jax
import jax.numpy as jnp
from jax import lax
from jax.experimental import pallas as pl
from jax.experimental.pallas import tpu as pltpu

SIGMA_PRIOR = 0.1


# --------------------------------------------------------------------------
# fused Bayesian weight sampling + KL reduction (one pass over mu/rho/eps)
# --------------------------------------------------------------------------
def _sample_kl_kernel(mu_ref, rho_ref, eps_ref, w_ref, kl_ref, *, sigma_prior):
    mu = mu_ref[...]
    rho = rho_ref[...]
    sigma = jax.nn.softplus(rho)                 # stable softplus (matches sampling)
    w_ref[...] = mu + sigma * eps_ref[...]
    kl = (math.log(sigma_prior) - jnp.log(sigma)
          + (sigma * sigma + mu * mu) / (2.0 * sigma_prior ** 2) - 0.5)
    kl_ref[...] = jnp.sum(jnp.sum(kl, axis=1, keepdims=True), axis=0, keepdims=True)


def sample_and_kl(layer, key, sigma_prior):
    mu, rho = layer["mu"], layer["rho"]
    eps = jax.random.normal(key, mu.shape, jnp.float32)
    w, kl = pl.pallas_call(
        functools.partial(_sample_kl_kernel, sigma_prior=float(sigma_prior)),
        out_shape=(jax.ShapeDtypeStruct(mu.shape, jnp.float32),
                   jax.ShapeDtypeStruct((1, 1), jnp.float32)),
        compiler_params=pltpu.CompilerParams(vmem_limit_bytes=48 * 1024 * 1024),
    )(mu, rho, eps)
    return w, kl


# --------------------------------------------------------------------------
# fused conv1 -> pool1 -> conv2 -> pool2 (single pallas_call per batch block)
# --------------------------------------------------------------------------
def _conv_stage_kernel(xph_ref, w1_ref, w2_ref, o_ref, p1_ref, pat_ref):
    """conv1(5x5, 1->20, 'same') -> maxpool2 -> conv2(5x5, 20->50, 'same') -> maxpool2.

    xph_ref: (B, 16, 8, 8, 1)   mod-4 phase planes of the zero-padded 32x32 input:
             xph[b, 4*alpha + beta, t, s, 0] = xpad[b, 4*t + alpha, 4*s + beta, 0]
    w1_ref : (25, 20)   conv1 weights, row = kh*5 + kw
    w2_ref : (500, 50)  conv2 weights, row = (kh*5 + kw)*20 + cin
    o_ref  : (B, 49, 50) pooled2 output, row = h*7 + w  (HWC-flatten ready)
    p1_ref : (B, 4, 9, 9, 20) VMEM scratch: mod-2 phase planes of the zero-padded
             (18x18) pooled1 activation: p1[b, 2r + s, t, u, :] = pool1pad[2t+r, 2u+s]
    pat_ref: (4, B, 7, 7, 500) VMEM scratch: conv2 im2col patches, one slab per
             2x2 pooling phase (p, q).
    """
    B = o_ref.shape[0]

    # -------- stage A: conv1 + pool1, emitted directly as phase planes --------
    p1_ref[...] = jnp.zeros_like(p1_ref)     # zero border == conv2 'same' padding

    def conv1_phase(i, j):
        # conv1 output at pixels (4u + i, 4v + j), u, v in 0..6  -> (B, 7, 7, 20)
        acc = jnp.zeros((B, 7, 7, 20), jnp.float32)
        for kh in range(5):
            for kw in range(5):
                m, n = i + kh, j + kw                                  # 0..7
                src = xph_ref[:, (m % 4) * 4 + (n % 4),
                              m // 4:m // 4 + 7,
                              n // 4:n // 4 + 7, :]                    # (B, 7, 7, 1)
                wrow = w1_ref[kh * 5 + kw:kh * 5 + kw + 1, :]          # (1, 20)
                acc = acc + src * wrow                                 # VPU FMA (cin==1)
        return acc

    for r in range(2):
        for s in range(2):
            best = None
            for p in range(2):
                for q in range(2):
                    cp = conv1_phase(2 * r + p, 2 * s + q)
                    best = cp if best is None else jnp.maximum(best, cp)
            # pooled1[2u + r, 2v + s] -> interior of the padded phase plane (r, s)
            p1_ref[:, 2 * r + s, 1:8, 1:8, :] = best

    # -------- stage B: conv2 + pool2 via im2col matmuls (K = 500) --------
    for p in range(2):
        for q in range(2):
            for a in range(5):
                for c in range(5):
                    rr, dt = (p + a) % 2, (p + a) // 2
                    ss, dv = (q + c) % 2, (q + c) // 2
                    col = (a * 5 + c) * 20
                    src = p1_ref[:, 2 * rr + ss, dt:dt + 7, dv:dv + 7, :]  # (B,7,7,20)
                    pat_ref[2 * p + q, :, :, :, col:col + 20] = src

    w2 = w2_ref[...]                                                   # (500, 50)
    for b in range(B):
        for u in range(7):
            best = None
            for p in range(2):
                for q in range(2):
                    z = jnp.dot(pat_ref[2 * p + q, b, u, :, :], w2,
                                preferred_element_type=jnp.float32)    # (7, 50)
                    best = z if best is None else jnp.maximum(best, z)
            o_ref[b, u * 7:(u + 1) * 7, :] = best


def conv_stage(xph, w1, w2, *, block_n=None):
    N = xph.shape[0]
    if block_n is None:
        block_n = N if N <= 8 else 8
    assert N % block_n == 0, "batch must be divisible by the batch block"
    return pl.pallas_call(
        _conv_stage_kernel,
        out_shape=jax.ShapeDtypeStruct((N, 49, 50), jnp.float32),
        grid=(N // block_n,),
        in_specs=[pl.BlockSpec((block_n, 16, 8, 8, 1), lambda i: (i, 0, 0, 0, 0)),
                  pl.BlockSpec((25, 20), lambda i: (0, 0)),
                  pl.BlockSpec((500, 50), lambda i: (0, 0))],
        out_specs=pl.BlockSpec((block_n, 49, 50), lambda i: (i, 0, 0)),
        scratch_shapes=[pltpu.VMEM((block_n, 4, 9, 9, 20), jnp.float32),
                        pltpu.VMEM((4, block_n, 7, 7, 500), jnp.float32)],
        compiler_params=pltpu.CompilerParams(dimension_semantics=("parallel",)),
    )(xph, w1, w2)


# --------------------------------------------------------------------------
# fused linear1 -> activation -> linear2 -> softmax
# --------------------------------------------------------------------------
def _dense_kernel(x_ref, w1_ref, w2_ref, o_ref, *, activation):
    h = jnp.dot(x_ref[...], w1_ref[...], preferred_element_type=jnp.float32)
    if activation == "relu":
        h = jnp.maximum(h, 0.0)
    elif activation == "tanh":
        h = jnp.tanh(h)
    # "linear" -> identity
    z = jnp.dot(h, w2_ref[...], preferred_element_type=jnp.float32)
    z = z - jnp.max(z, axis=-1, keepdims=True)
    e = jnp.exp(z)
    o_ref[...] = e / jnp.sum(e, axis=-1, keepdims=True)


def dense_stage(x, w_lin1, w_lin2, activation):
    if activation not in ("relu", "tanh", "linear"):
        raise NotImplementedError("Other activations have not been implemented!")
    N = x.shape[0]
    out = w_lin2.shape[1]
    return pl.pallas_call(
        functools.partial(_dense_kernel, activation=activation),
        out_shape=jax.ShapeDtypeStruct((N, out), jnp.float32),
        compiler_params=pltpu.CompilerParams(vmem_limit_bytes=48 * 1024 * 1024),
    )(x, w_lin1, w_lin2)


# --------------------------------------------------------------------------
# parameters & forward
# --------------------------------------------------------------------------
def init_params(key, output_size=10):
    ks = jax.random.split(key, 4)

    def layer(k, shape):
        return {"mu": 0.1 * jax.random.normal(k, shape, jnp.float32),
                "rho": jnp.full(shape, -3.0, jnp.float32)}

    return {
        "conv1":   layer(ks[0], (25, 20)),            # (kh*5 + kw, cout)
        "conv2":   layer(ks[1], (500, 50)),           # ((kh*5 + kw)*20 + cin, cout)
        "linear1": layer(ks[2], (7 * 7 * 50, 500)),   # rows in (h, w, c) order
        "linear2": layer(ks[3], (500, output_size)),
    }


def conv_network_forward(params, x_nchw, key, activation="relu",
                         sigma_prior=SIGMA_PRIOR):
    N = x_nchw.shape[0]
    keys = jax.random.split(key, 4)
    w1, kl1 = sample_and_kl(params["conv1"], keys[0], sigma_prior)
    w2, kl2 = sample_and_kl(params["conv2"], keys[1], sigma_prior)
    wl1, kl3 = sample_and_kl(params["linear1"], keys[2], sigma_prior)
    wl2, kl4 = sample_and_kl(params["linear2"], keys[3], sigma_prior)

    # NCHW -> NHWC, 'same' zero padding for the 5x5 conv, then a mod-4
    # space-to-depth phase split (cheap XLA layout ops on the tiny input).
    x = jnp.transpose(x_nchw, (0, 2, 3, 1)).astype(jnp.float32)        # (N,28,28,1)
    xpad = jnp.pad(x, ((0, 0), (2, 2), (2, 2), (0, 0)))                # (N,32,32,1)
    xph = xpad.reshape(N, 8, 4, 8, 4, 1).transpose(0, 2, 4, 1, 3, 5)   # (N,4,4,8,8,1)
    xph = xph.reshape(N, 16, 8, 8, 1)

    feat = conv_stage(xph, w1, w2)                      # (N, 49, 50), HWC order
    probs = dense_stage(feat.reshape(N, 49 * 50), wl1, wl2, activation)

    kl = (kl1 + kl2 + kl3 + kl4).reshape(1)
    return probs, kl


# --------------------------------------------------------------------------
# pure-JAX reference (used only for the self-check in __main__)
# --------------------------------------------------------------------------
def _reference_forward(params, x_nchw, key, activation, sigma_prior):
    keys = jax.random.split(key, 4)

    def sample(layer, k):
        sigma = jax.nn.softplus(layer["rho"])
        eps = jax.random.normal(k, layer["mu"].shape, jnp.float32)
        w = layer["mu"] + sigma * eps
        kl = jnp.sum(math.log(sigma_prior) - jnp.log(sigma)
                     + (sigma ** 2 + layer["mu"] ** 2) / (2.0 * sigma_prior ** 2) - 0.5)
        return w, kl

    w1, kl1 = sample(params["conv1"], keys[0])
    w2, kl2 = sample(params["conv2"], keys[1])
    wl1, kl3 = sample(params["linear1"], keys[2])
    wl2, kl4 = sample(params["linear2"], keys[3])

    hp = lax.Precision.HIGHEST
    y = jnp.transpose(x_nchw, (0, 2, 3, 1)).astype(jnp.float32)
    y = lax.conv_general_dilated(y, w1.reshape(5, 5, 1, 20), (1, 1), "SAME",
                                 dimension_numbers=("NHWC", "HWIO", "NHWC"),
                                 precision=hp)
    y = y.reshape(y.shape[0], 14, 2, 14, 2, 20).max(axis=(2, 4))
    y = lax.conv_general_dilated(y, w2.reshape(5, 5, 20, 50), (1, 1), "SAME",
                                 dimension_numbers=("NHWC", "HWIO", "NHWC"),
                                 precision=hp)
    y = y.reshape(y.shape[0], 7, 2, 7, 2, 50).max(axis=(2, 4))
    y = y.reshape(y.shape[0], -1)                       # (N, 2450) in (h, w, c) order
    y = jnp.dot(y, wl1, precision=hp)
    if activation == "relu":
        y = jnp.maximum(y, 0.0)
    elif activation == "tanh":
        y = jnp.tanh(y)
    y = jnp.dot(y, wl2, precision=hp)
    probs = jax.nn.softmax(y, axis=-1)
    return probs, (kl1 + kl2 + kl3 + kl4).reshape(1)


if __name__ == "__main__":
    key = jax.random.PRNGKey(0)
    pkey, xkey, skey = jax.random.split(key, 3)

    output_size = 10
    params = init_params(pkey, output_size=output_size)
    # 28x28 single-channel input is implied by linear1's in_features = 50*7*7.
    x = jax.random.normal(xkey, (2, 1, 28, 28), jnp.float32)

    probs, kl = conv_network_forward(params, x, skey, activation="relu")
    jax.block_until_ready((probs, kl))

    assert probs.shape == (2, output_size)
    assert kl.shape == (1,)
    assert bool(jnp.all(jnp.isfinite(probs))) and bool(jnp.isfinite(kl[0]))
    assert bool(jnp.allclose(jnp.sum(probs, axis=-1), 1.0, atol=1e-4))

    ref_probs, ref_kl = _reference_forward(params, x, skey, "relu", SIGMA_PRIOR)
    assert bool(jnp.allclose(probs, ref_probs, atol=2e-2, rtol=2e-2)), (
        float(jnp.max(jnp.abs(probs - ref_probs))))
    assert bool(jnp.allclose(kl, ref_kl, rtol=1e-3)), (kl, ref_kl)

    print("KERNEL_OK")
</pallas_src>

<mosaic_0001>
module attributes {stable_mosaic.version = 11 : i64} {
  func.func @_sample_kl_kernel(%arg0: memref<25x20xf32, #tpu.memory_space<vmem>>, %arg1: memref<25x20xf32, #tpu.memory_space<vmem>>, %arg2: memref<25x20xf32, #tpu.memory_space<vmem>>, %arg3: memref<25x20xf32, #tpu.memory_space<vmem>>, %arg4: memref<1x1xf32, #tpu.memory_space<vmem>>) attributes {dimension_semantics = [], scalar_prefetch = 0 : i64, scratch_operands = 0 : i64, tpu.core_type = #tpu.core_type<tc>} {
    %c0 = arith.constant 0 : index
    %c0_0 = arith.constant 0 : index
    %0 = vector.load %arg0[%c0, %c0_0] : memref<25x20xf32, #tpu.memory_space<vmem>>, vector<25x20xf32>
    %c0_1 = arith.constant 0 : index
    %c0_2 = arith.constant 0 : index
    %1 = vector.load %arg1[%c0_1, %c0_2] : memref<25x20xf32, #tpu.memory_space<vmem>>, vector<25x20xf32>
    %cst = arith.constant 0.000000e+00 : f32
    %2 = vector.broadcast %cst : f32 to vector<25x20xf32>
    %3 = arith.maximumf %1, %2 : vector<25x20xf32>
    %4 = vector.broadcast %cst : f32 to vector<25x20xf32>
    %5 = arith.subf %1, %4 : vector<25x20xf32>
    %6 = arith.cmpf one, %5, %5 : vector<25x20xf32>
    %7 = vector.broadcast %cst : f32 to vector<25x20xf32>
    %8 = arith.addf %1, %7 : vector<25x20xf32>
    %9 = math.absf %5 : vector<25x20xf32>
    %cst_3 = arith.constant 0.000000e+00 : f32
    %10 = vector.broadcast %cst_3 : f32 to vector<25x20xf32>
    %11 = arith.subf %10, %9 : vector<25x20xf32>
    %12 = math.exp %11 : vector<25x20xf32>
    %13 = math.log1p %12 : vector<25x20xf32>
    %14 = arith.addf %3, %13 : vector<25x20xf32>
    %15 = arith.select %6, %8, %14 : vector<25x20xi1>, vector<25x20xf32>
    %c0_4 = arith.constant 0 : index
    %c0_5 = arith.constant 0 : index
    %16 = vector.load %arg2[%c0_4, %c0_5] : memref<25x20xf32, #tpu.memory_space<vmem>>, vector<25x20xf32>
    %17 = arith.mulf %15, %16 : vector<25x20xf32>
    %18 = arith.addf %0, %17 : vector<25x20xf32>
    %c0_6 = arith.constant 0 : index
    %c0_7 = arith.constant 0 : index
    %19 = vector.load %arg3[%c0_6, %c0_7] : memref<25x20xf32, #tpu.memory_space<vmem>>, vector<25x20xf32>
    tpu.vector_store %arg3[%c0_6, %c0_7], %18 {strides = array<i32>} : memref<25x20xf32, #tpu.memory_space<vmem>>, vector<25x20xf32>,
    %20 = math.log %15 : vector<25x20xf32>
    %cst_8 = arith.constant -2.30258512 : f32
    %21 = vector.broadcast %cst_8 : f32 to vector<25x20xf32>
    %22 = arith.subf %21, %20 : vector<25x20xf32>
    %23 = arith.mulf %15, %15 : vector<25x20xf32>
    %24 = arith.mulf %0, %0 : vector<25x20xf32>
    %25 = arith.addf %23, %24 : vector<25x20xf32>
    %cst_9 = arith.constant 2.000000e-02 : f32
    %26 = vector.broadcast %cst_9 : f32 to vector<25x20xf32>
    %27 = arith.divf %25, %26 : vector<25x20xf32>
    %28 = arith.addf %22, %27 : vector<25x20xf32>
    %cst_10 = arith.constant 5.000000e-01 : f32
    %29 = vector.broadcast %cst_10 : f32 to vector<25x20xf32>
    %30 = arith.subf %28, %29 : vector<25x20xf32>
    %cst_11 = arith.constant dense<0.000000e+00> : vector<25xf32>
    %31 = vector.multi_reduction <add>, %30, %cst_11 [1] : vector<25x20xf32> to vector<25xf32>
    %32 = vector.shape_cast %31 : vector<25xf32> to vector<25x1xf32>
    %cst_12 = arith.constant dense<0.000000e+00> : vector<1xf32>
    %33 = vector.multi_reduction <add>, %32, %cst_12 [0] : vector<25x1xf32> to vector<1xf32>
    %34 = vector.shape_cast %33 : vector<1xf32> to vector<1x1xf32>
    %c0_13 = arith.constant 0 : index
    %c0_14 = arith.constant 0 : index
    %35 = vector.load %arg4[%c0_13, %c0_14] : memref<1x1xf32, #tpu.memory_space<vmem>>, vector<1x1xf32>
    tpu.vector_store %arg4[%c0_13, %c0_14], %34 {strides = array<i32>} : memref<1x1xf32, #tpu.memory_space<vmem>>, vector<1x1xf32>,
    return
  }
}

</mosaic_0001>

<bundles_post_ra>
// kernel: tpu_custom_call.1
= control target key start
LH: loop header
LB: loop body
LE: loop exit
PB: predicated region body
PF: predicated region fallthrough
CT: control target
= control target key end

     0   :  { %s423_s0 = inlined_call_operand.vmem [shape: f32[25,20], index: 0, kind: input, shape index: {}]   ;;  %s424_s1 = inlined_call_operand.vmem [shape: f32[25,20], index: 1, kind: input, shape index: {}]   ;;  %s425_s2 = inlined_call_operand.vmem [shape: f32[25,20], index: 2, kind: input, shape index: {}]   ;;  %s426_s3 = inlined_call_operand.vmem [shape: f32[25,20], index: 3, kind: output, shape index: {0}]   ;;  %s427_s4 = inlined_call_operand.hbm [shape: f32[1,1], index: 4, kind: output, shape index: {1}]  }
   0x1   :  { %v291_v0 = vld [vmem:[%s424_s1] sm:$0xff]  ;;  %v297_v2 = vld [vmem:[%s424_s1 + $0x10] sm:$0xff]  ;;  %v302_v3 = vld [vmem:[%s424_s1 + $0x8] sm:$0xff] }
   0x2   :  { %v37_v1 = vand.u32 2147483647, %v291_v0  ;;  %v39_v4 = vand.u32 2147483647, %v297_v2  ;;  %v308_v5 = vld [vmem:[%s424_s1 + $0x18] sm:$0x1] }
   0x3   :  { %v38_v7 = vand.u32 2147483647, %v302_v3 }
   0x4   :  { %v41_v6 = vsub.f32 0.0, %v37_v1 }
   0x5   :  { %10 = vsyncpa [#allocation3], 0  ;;  %v43_v8 = vsub.f32 0.0, %v39_v4  ;;  %v40_v9 = vand.u32 2147483647, %v308_v5  ;;  %v42_v11 = vsub.f32 0.0, %v38_v7  ;;  %vm29_vm0 = vcmp.ne.f32.partialorder %v291_v0, %v291_v0 }
   0x6   :  { %v45_v10 = vmul.f32 1.442695, %v41_v6  ;;  %v261_v12 = vmov 0.02   ;;  %v318_v29 = vld [vmem:[%s423_s0] sm:$0xff]  ;;  %v25_v37 = vmax.f32 %v291_v0, 0.0  ;;  %vm31_vm2 = vcmp.ne.f32.partialorder %v297_v2, %v297_v2 }
   0x7   :  { %209 = vrcp.f32 %v261_v12  ;;  %v49_v13 = vmul.f32 1.442695, %v43_v8  ;;  %v44_v14 = vsub.f32 0.0, %v40_v9  ;;  %v47_v15 = vmul.f32 1.442695, %v42_v11  ;;  %v19_v45 = vld [vmem:[%s423_s0 + $0x10] sm:$0xff] }
   0x8   :  { %211 = vpow2.f32 %v45_v10  ;;  %v131_v40 = vmul.f32 %v318_v29, %v318_v29  ;;  %v27_v41 = vmax.f32 %v297_v2, 0.0  ;;  %v26_v47 = vmax.f32 %v302_v3, 0.0  ;;  %v97_v63 = vld [vmem:[%s425_s2] sm:$0xff]  ;;  %v99_v8 = vld [vmem:[%s425_s2 + $0x10] sm:$0xff]  ;;  %v18_v12 = vld [vmem:[%s423_s0 + $0x8] sm:$0xff]  ;;  %s192_s21 = sshll.u32 %s427_s4, 4  ;;  %s193_s21 = int_to_ptr.hbm [resolvable:$true] %s192_s21 }
   0x9   :  { %213 = vpow2.f32 %v49_v13  ;;  %v51_v16 = vmul.f32 1.442695, %v44_v14  ;;  %vm109_vm4 = vcmask 162816   ;;  %vm30_vm5 = vcmp.ne.f32.partialorder %v302_v3, %v302_v3 }
   0xa   :  { %215 = vpow2.f32 %v47_v15  ;;  %v133_v58 = vmul.f32 %v19_v45, %v19_v45  ;;  %v28_v60 = vmax.f32 %v308_v5, 0.0  ;;  %vm32_vm7 = vcmp.ne.f32.partialorder %v308_v5, %v308_v5 }
   0xb   :  { %217 = vpow2.f32 %v51_v16  ;;  %vm113_vm10 = vcmask 155648   ;;  %vm172_vm11 = vcmask 1040384   ;;  %vm181_vm12 = vcmask 0  }
   0xd   :  { %v312_v17 = vpop.eup %209 }
   0xe   :  { %v212_v18 = vpop.eup %211  ;;  %v140_v23 = vmul.f32 0.02, %v312_v17  ;;  %vm144_vm8 = vweird.f32 %v312_v17 }
   0xf   :  { %v214_v19 = vpop.eup %213  ;;  %v53_v20 = vadd.f32 1.0, %v212_v18  ;;  %v56_v21 = vmul.f32 -0.5, %v212_v18  ;;  %v59_v30 = vand.u32 2147483647, %v212_v18 }
  0x10   :  { %v216_v22 = vpop.eup %215  ;;  %v71_v24 = vadd.f32 1.0, %v214_v19  ;;  %v74_v25 = vmul.f32 -0.5, %v214_v19  ;;  %v141_v34 = vsub.f32 1.0, %v140_v23  ;;  %v77_v35 = vand.u32 2147483647, %v214_v19 }
  0x11   :  { %v218_v26 = vpop.eup %217  ;;  %219 = vlog2.f32 %v53_v20  ;;  %v57_v27 = vadd.f32 1.0, %v56_v21  ;;  %v62_v28 = vadd.f32 1.0, %v216_v22  ;;  %v65_v32 = vmul.f32 -0.5, %v216_v22  ;;  %v98_v21 = vld [vmem:[%s425_s2 + $0x8] sm:$0xff] }
  0x12   :  { %221 = vlog2.f32 %v71_v24  ;;  %v75_v31 = vadd.f32 1.0, %v74_v25  ;;  %v80_v33 = vadd.f32 1.0, %v218_v26  ;;  %v83_v36 = vmul.f32 -0.5, %v218_v26  ;;  %v20_v25 = vld [vmem:[%s423_s0 + $0x18] sm:$0x1] }
  0x13   :  { %223 = vlog2.f32 %v62_v28  ;;  %v66_v38 = vadd.f32 1.0, %v65_v32  ;;  %v58_v39 = vmul.f32 %v212_v18, %v57_v27  ;;  %v68_v42 = vand.u32 2147483647, %v216_v22 }
  0x14   :  { %225 = vlog2.f32 %v80_v33  ;;  %vm326_vm1 = vcmp.lt.f32.partialorder %v59_v30, 0.0004427343  ;;  %v76_v46 = vmul.f32 %v214_v19, %v75_v31  ;;  %v142_v50 = vmul.f32 %v312_v17, %v141_v34 }
  0x15   :  { %vm337_vm3 = vcmp.lt.f32.partialorder %v77_v35, 0.0004427343  ;;  %v84_v52 = vadd.f32 1.0, %v83_v36  ;;  %v67_v54 = vmul.f32 %v216_v22, %v66_v38  ;;  %v86_v55 = vand.u32 2147483647, %v218_v26 }
  0x16   :  { %vm345_vm6 = vcmp.lt.f32.partialorder %v68_v42, 0.0004427343  ;;  %v143_v6 = vadd.f32 %v312_v17, %v142_v50  ;;  %v132_v24 = vmul.f32 %v18_v12, %v18_v12  ;;  %v134_v33 = vmul.f32 %v20_v25, %v20_v25 }
  0x17   :  { %v220_v43 = vpop.eup %219  ;;  %v85_v10 = vmul.f32 %v218_v26, %v84_v52  ;;  %vm371_vm9 = vcmp.lt.f32.partialorder %v86_v55, 0.0004427343 }
  0x18   :  { %v222_v48 = vpop.eup %221  ;;  %v55_v49 = vmul.f32 0.6931472, %v220_v43  ;;  %v145_v22 = vsel %vm144_vm8, %v312_v17, %v143_v6  ;;  %v100_v17 = vld [vmem:[%s425_s2 + $0x18] sm:$0x1] }
  0x19   :  { %v73_v53 = vmul.f32 0.6931472, %v222_v48  ;;  %v224_v56 = vpop.eup %223 }
  0x1a   :  { %v61_v57 = vsel %vm326_vm1, %v58_v39, %v55_v49  ;;  %v226_v61 = vpop.eup %225  ;;  %v64_v4 = vmul.f32 0.6931472, %v224_v56 }
  0x1b   :  { %v89_v62 = vadd.f32 %v61_v57, %v25_v37  ;;  %v79_v1 = vsel %vm337_vm3, %v76_v46, %v73_v53  ;;  %v82_v9 = vmul.f32 0.6931472, %v226_v61 }
  0x1c   :  { %v91_v7 = vadd.f32 %v79_v1, %v27_v41  ;;  %v70_v13 = vsel %vm345_vm6, %v67_v54, %v64_v4 }
  0x1d   :  { %v93_v11 = vsel %vm29_vm0, %v291_v0, %v89_v62  ;;  %v90_v20 = vadd.f32 %v70_v13, %v26_v47 }
  0x1e   :  { %v101_v15 = vmul.f32 %v97_v63, %v93_v11  ;;  %227 = vlog2.f32 %v93_v11  ;;  %v127_v16 = vmul.f32 %v93_v11, %v93_v11  ;;  %v95_v0 = vsel %vm31_vm2, %v297_v2, %v91_v7 }
  0x1f   :  { %v103_v18 = vmul.f32 %v99_v8, %v95_v0  ;;  %229 = vlog2.f32 %v95_v0  ;;  %v129_v19 = vmul.f32 %v95_v0, %v95_v0  ;;  %v88_v2 = vsel %vm371_vm9, %v85_v10, %v82_v9 }
  0x20   :  { %v105_v23 = vadd.f32 %v101_v15, %v318_v29  ;;  %v135_v26 = vadd.f32 %v131_v40, %v127_v16  ;;  %v94_v28 = vsel %vm30_vm5, %v302_v3, %v90_v20  ;;  %v92_v30 = vadd.f32 %v88_v2, %v28_v60 }
  0x21   :  { %v107_v27 = vadd.f32 %v103_v18, %v19_v45  ;;  %v137_v29 = vadd.f32 %v133_v58, %v129_v19  ;;  %v102_v31 = vmul.f32 %v98_v21, %v94_v28  ;;  %231 = vlog2.f32 %v94_v28 }
  0x22   :  { %110 = vst.msk [vmem:[%s426_s3] sm:$0xff] %vm109_vm4, %v105_v23  ;;  %v128_v32 = vmul.f32 %v94_v28, %v94_v28  ;;  %v96_v3 = vsel %vm32_vm7, %v308_v5, %v92_v30  ;;  %v146_v39 = vmul.f32 %v145_v22, %v135_v26 }
  0x23   :  { %112 = vst.msk [vmem:[%s426_s3 + $0x10] sm:$0xff] %vm109_vm4, %v107_v27  ;;  %v106_v35 = vadd.f32 %v102_v31, %v18_v12  ;;  %v104_v36 = vmul.f32 %v100_v17, %v96_v3  ;;  %233 = vlog2.f32 %v96_v3  ;;  %v130_v41 = vmul.f32 %v96_v3, %v96_v3 }
  0x24   :  { %v228_v34 = vpop.eup %227  ;;  %v136_v40 = vadd.f32 %v132_v24, %v128_v32  ;;  %v148_v43 = vmul.f32 %v145_v22, %v137_v29 }
  0x25   :  { %v230_v37 = vpop.eup %229  ;;  %v116_v38 = vmul.f32 0.6931472, %v228_v34  ;;  %111 = vst.msk [vmem:[%s426_s3 + $0x8] sm:$0xff] %vm109_vm4, %v106_v35  ;;  %v108_v44 = vadd.f32 %v104_v36, %v20_v25  ;;  %v138_v5 = vadd.f32 %v134_v33, %v130_v41 }
  0x26   :  { %v120_v42 = vmul.f32 0.6931472, %v230_v37  ;;  %v147_v50 = vmul.f32 %v145_v22, %v136_v40 }
  0x27   :  { %v123_v45 = vsub.f32 -2.3025851, %v116_v38  ;;  %v232_v46 = vpop.eup %231  ;;  %114 = vst.msk [vmem:[%s426_s3 + $0x18] sm:$0x1] %vm113_vm10, %v108_v44  ;;  %v149_v56 = vmul.f32 %v145_v22, %v138_v5  ;;  %s262_s3 = smov [#allocation2]  }
  0x28   :  { %v125_v47 = vsub.f32 -2.3025851, %v120_v42  ;;  %v118_v49 = vmul.f32 0.6931472, %v232_v46  ;;  %s190_s18 = sshll.u32 %s262_s3, 4  ;;  %s191_s18 = int_to_ptr.vmem [resolvable:$true] %s190_s18 }
  0x29   :  { %v150_v48 = vadd.f32 %v146_v39, %v123_v45  ;;  %v234_v51 = vpop.eup %233 }
  0x2a   :  { %v152_v52 = vadd.f32 %v148_v43, %v125_v47  ;;  %v124_v54 = vsub.f32 -2.3025851, %v118_v49  ;;  %v122_v55 = vmul.f32 0.6931472, %v234_v51 }
  0x2b   :  { %v203_v53 = vadd.f32 -0.5, %v150_v48 }
  0x2c   :  { %v205_v57 = vadd.f32 -0.5, %v152_v52  ;;  %v151_v59 = vadd.f32 %v147_v50, %v124_v54  ;;  %v126_v60 = vsub.f32 -2.3025851, %v122_v55 }
  0x2d   :  { %v158_v58 = vsel %vm109_vm4, %v203_v53, 0.0 }
  0x2e   :  { %159 = vadd.xlane.f32.xlu0 %v158_v58  ;;  %v164_v61 = vsel %vm109_vm4, %v205_v57, 0.0  ;;  %v204_v62 = vadd.f32 -0.5, %v151_v59  ;;  %v153_v63 = vadd.f32 %v149_v56, %v126_v60 }
  0x2f   :  { %165 = vadd.xlane.f32.xlu1 %v164_v61 }
  0x30   :  { %v206_v1 = vadd.f32 -0.5, %v153_v63  ;;  %v161_v4 = vsel %vm109_vm4, %v204_v62, 0.0 }
  0x32   :  { %v167_v6 = vsel %vm113_vm10, %v206_v1, 0.0 }
  0x36   :  { %162 = vadd.xlane.f32.xlu0 %v161_v4 }
  0x37   :  { %168 = vadd.xlane.f32.xlu1 %v167_v6 }
  0xa1   :  { %v160_v7 = vpop.xlane.xlu0 %159 }
  0xa2   :  { %v166_v8 = vpop.xlane.xlu1 %165 }
  0xa9   :  { %v163_v9 = vpop.xlane.xlu0 %162 }
  0xaa   :  { %v170_v10 = vadd.f32 %v163_v9, %v160_v7  ;;  %v169_v11 = vpop.xlane.xlu1 %168 }
  0xab   :  { %v173_v12 = vsel %vm172_vm11, %v169_v11, 0.0 }
  0xac   :  { %v171_v13 = vadd.f32 %v170_v10, %v166_v8 }
  0xae   :  { %v174_v14 = vadd.f32 %v173_v12, %v171_v13 }
  0xb0   :  { %v175_v15 = vrot.slane %v174_v14, 4 }
  0xb2   :  { %v176_v16 = vadd.f32 %v175_v15, %v174_v14 }
  0xb4   :  { %v177_v0 = vrot.slane %v176_v16, 2 }
  0xb6   :  { %v178_v18 = vadd.f32 %v177_v0, %v176_v16 }
  0xb8   :  { %v179_v19 = vrot.slane %v178_v18, 1 }
  0xba   :  { %v180_v20 = vadd.f32 %v179_v19, %v178_v18 }
  0xbc   :  { %182 = vst.msk [vmem:[#allocation2] sm:$0x1] %vm181_vm12, %v180_v20 }
  0xbd   :  { %195 = dma.vmem_to_hbm [thread:$0]  %s191_s18, 16, %s193_s21, [#allocation3]  }
  0xbe   :  { %259 = dma.done.wait [#allocation3], 16  }
  0xbf   :  { %260 = vsyncadd [#allocation3], 4294967280 }
  0xc0   :  { %202 = vsyncpa [#allocation3], 1 }

</bundles_post_ra>
